<compile_context>
chip_gen: v7x
topology: tpu7x:2x2x1
jax: 0.10.0
libtpu: 0.0.40
codegen_flags: <defaults>
</compile_context>

<pallas_src>
import functools
import math

import jax
import jax.numpy as jnp
from jax import lax
from jax.experimental import pallas as pl
from jax.experimental.pallas import tpu as pltpu

_LANE = 128                      # vreg lane width
_SUB = 8                         # sublane granularity (f32)
_TARGET_TILE_F32_BYTES = 4 << 20  # per-step tile budget, in f32 bytes


def _round_up(a, b):
    return (a + b - 1) // b * b


def _static_int_pow(x, n):
    """x**n for a static positive int n via exponentiation-by-squaring (VPU only)."""
    result = None
    base = x
    while n:
        if n & 1:
            result = base if result is None else result * base
        n >>= 1
        if n:
            base = base * base
    return result


def _apply_static_pow(xc, p_static):
    """xc**p for a static p that is a positive multiple of 0.5 (xc > 0)."""
    k2 = int(round(p_static * 2.0))
    if k2 % 2 == 0:
        return _static_int_pow(xc, k2 // 2)          # integer p: VPU only
    return _static_int_pow(jnp.sqrt(xc), k2)         # half-integer: 1 EUP sqrt + VPU


def _maybe_static_p(p_arr):
    """Return p as a float multiple of 0.5 in [0.5, 16] if concrete, else None."""
    try:
        pv = float(jax.device_get(p_arr).reshape(-1)[0])
    except (jax.errors.ConcretizationTypeError,
            jax.errors.TracerArrayConversionError, TypeError):
        return None                                   # traced p (jit): general path
    k2 = round(pv * 2.0)
    if abs(pv * 2.0 - k2) < 1e-6 and 1 <= k2 <= 32:
        return k2 / 2.0
    return None


def _gem_kernel(p_ref, x_ref, o_ref, acc_ref, *,
                eps, log_hw, p_static, rb, hk, hw, need_mask):
    # p_ref : (1,) f32 in SMEM     (learnable GeM exponent; unused if p_static)
    # x_ref : (rb*128, hk) tile in VMEM (input dtype)
    # o_ref : (rb, 128) f32 tile in VMEM (lane-dense)
    # acc_ref: (rb, 128) f32 scratch (sum over HW, resident across the k axis)
    k = pl.program_id(1)

    @pl.when(k == 0)
    def _init():
        acc_ref[...] = jnp.zeros_like(acc_ref)

    # (rb*128, hk) -> (rb, 128, hk): splits the sublane axis on a 128 boundary,
    # which is layout-preserving (8-row tiles stay aligned).
    x = x_ref[...].astype(jnp.float32).reshape(rb, _LANE, hk)
    xc = jnp.maximum(x, eps)                          # clamp(min=eps)
    if p_static is not None:
        xp = _apply_static_pow(xc, p_static)          # VPU fast path (frozen p)
    else:
        xp = jnp.exp(p_ref[0] * jnp.log(xc))          # EUP path (general p)
    if need_mask:                                     # ragged last HW chunk
        col = lax.broadcasted_iota(jnp.int32, xp.shape, 2) + k * hk
        xp = jnp.where(col < hw, xp, 0.0)
    acc_ref[...] += jnp.sum(xp, axis=-1)              # cross-lane reduce (XLU)

    @pl.when(k == pl.num_programs(1) - 1)
    def _finalize():
        inv_p = (1.0 / p_static) if p_static is not None else 1.0 / p_ref[0]
        # mean^(1/p) == exp((log(sum) - log(HW)) / p).  Note: for very large p,
        # eps^p underflows in f32 (matches the f32 reference).
        o_ref[...] = jnp.exp((jnp.log(acc_ref[...]) - log_hw) * inv_p)


def gem_pallas(x, p, eps=1e-6, *, p_static=None, allow_static_p=True):
    """GeM pooling.  x: (N, C, H, W), p: (1,) -> (N, C, 1, 1) in x.dtype.

    Pass `p_static` (Python number) to use the VPU fast path under jit, where
    p itself is a tracer; otherwise the wrapper concretizes p eagerly.
    """
    N, C, H, W = x.shape
    NC, HW = N * C, H * W
    out_dtype = x.dtype
    itemsize = jnp.dtype(x.dtype).itemsize

    p_arr = jnp.asarray(p, jnp.float32).reshape(-1)
    if p_static is None and allow_static_p:
        p_static = _maybe_static_p(p_arr)

    x2d = x.reshape(NC, HW)                 # zero-copy view of contiguous NCHW
    G = pl.cdiv(NC, _LANE)                  # number of 128-row lane groups
    hw_pad = _round_up(HW, _LANE)

    # ---- row blocking --------------------------------------------------------
    if NC >= _LANE * _SUB:
        # Bulk path: no padding; the ragged tail row block is a partial Pallas
        # block (out-of-bounds rows compute garbage and are sliced off below).
        rb_min = _SUB
        rb_cap = (NC // _LANE) // _SUB * _SUB         # keep block rows <= NC
    else:
        # Tiny input: pad rows up to a single full lane-group block (<128 rows).
        rb_min = rb_cap = G
        rows = G * _LANE
        if rows != NC:
            x2d = jnp.pad(x2d, ((0, rows - NC), (0, 0)))

    # ---- tile sizing (f32-element budget covers input + VPU temporaries) -----
    target_elems = _TARGET_TILE_F32_BYTES // 4
    if rb_min * _LANE * hw_pad <= target_elems:
        hk, need_mask = HW, False                     # whole HW per step
        rb = max(rb_min,
                 min(rb_cap, (target_elems // (_LANE * hw_pad)) // _SUB * _SUB))
    else:
        rb = rb_min                                   # large feature map: tile HW
        hk = max(_LANE, (target_elems // (rb * _LANE)) // _LANE * _LANE)
        need_mask = (HW % hk) != 0
    nb, nk = pl.cdiv(G, rb), pl.cdiv(HW, hk)

    # v7x megacore: prefer an even number of row blocks when the grid is small.
    if 1 < nb < 16 and nb % 2 == 1 and rb > rb_min:
        for cand in range(rb - _SUB, max(rb_min, rb // 2) - 1, -_SUB):
            if pl.cdiv(G, cand) % 2 == 0:
                rb, nb = cand, pl.cdiv(G, cand)
                break

    # ---- VMEM accounting (lane-padded) and limit, capped to physical VMEM ----
    tile_elems = rb * _LANE * _round_up(hk, _LANE)
    vmem_est = (2 * tile_elems * itemsize             # double-buffered input
                + 3 * tile_elems * 4                  # element-wise f32 temps
                + 3 * rb * _LANE * 4)                 # acc scratch + out buffers
    params = {"dimension_semantics": ("parallel", "arbitrary")}
    if vmem_est > (12 << 20):
        try:
            phys = pltpu.get_tpu_info().vmem_capacity_bytes
        except Exception:                             # info unavailable: assume v7x
            phys = 64 << 20
        params["vmem_limit_bytes"] = int(min(vmem_est + (8 << 20), phys - (8 << 20)))

    kernel = functools.partial(
        _gem_kernel, eps=float(eps), log_hw=math.log(HW), p_static=p_static,
        rb=rb, hk=hk, hw=HW, need_mask=need_mask)

    out2d = pl.pallas_call(
        kernel,
        out_shape=jax.ShapeDtypeStruct((nb * rb, _LANE), jnp.float32),
        grid_spec=pltpu.PrefetchScalarGridSpec(
            num_scalar_prefetch=0,
            grid=(nb, nk),
            in_specs=[
                pl.BlockSpec(memory_space=pltpu.MemorySpace.SMEM),      # p scalar
                pl.BlockSpec((rb * _LANE, hk), lambda i, k: (i, k)),    # x rows
            ],
            out_specs=pl.BlockSpec((rb, _LANE), lambda i, k: (i, 0)),
            scratch_shapes=[pltpu.VMEM((rb, _LANE), jnp.float32)],
        ),
        compiler_params=pltpu.CompilerParams(**params),
    )(p_arr, x2d)

    out = out2d.reshape(nb * rb * _LANE)[:NC].reshape(N, C, 1, 1)
    return out.astype(out_dtype)


def gem_reference(x, p, eps=1e-6):
    """Pure-JAX reference: avg_pool2d(clamp(x, eps)^p, (H, W))^(1/p)."""
    xc = jnp.maximum(x.astype(jnp.float32), eps)
    xp = xc ** p[0]
    m = jnp.mean(xp, axis=(-2, -1), keepdims=True)
    return (m ** (1.0 / p[0])).astype(x.dtype)


if __name__ == "__main__":
    key = jax.random.PRNGKey(0)
    N, C, H, W = 2, 4, 16, 16
    x = jax.random.normal(key, (N, C, H, W), dtype=jnp.float32)

    # Parameter init per module __init__: p = ones(1) * 3
    p = jnp.ones((1,), dtype=jnp.float32) * 3.0
    eps = 1e-6

    ref = gem_reference(x, p, eps)

    # Eager call: p is concrete -> VPU integer-pow fast path.
    out_fast = jax.block_until_ready(gem_pallas(x, p, eps))
    assert out_fast.shape == (N, C, 1, 1), out_fast.shape
    assert jnp.allclose(out_fast, ref, rtol=1e-4, atol=1e-5), (
        f"fast path max abs err {jnp.max(jnp.abs(out_fast - ref))}")

    # General path: exp(p*log(x)) kernel (used when p is traced / non-integer).
    out_gen = jax.block_until_ready(gem_pallas(x, p, eps, allow_static_p=False))
    assert jnp.allclose(out_gen, ref, rtol=1e-4, atol=1e-5), (
        f"general path max abs err {jnp.max(jnp.abs(out_gen - ref))}")

    # Under jit, thread the frozen exponent statically so the fast path fires.
    gem_jit = jax.jit(functools.partial(gem_pallas, eps=eps, p_static=3.0))
    out_jit = jax.block_until_ready(gem_jit(x, p))
    assert jnp.allclose(out_jit, ref, rtol=1e-4, atol=1e-5), (
        f"jit static-p path max abs err {jnp.max(jnp.abs(out_jit - ref))}")

    print("KERNEL_OK")
</pallas_src>

<mosaic_0001>
module attributes {stable_mosaic.version = 11 : i64} {
  func.func @_gem_kernel(%arg0: i32, %arg1: i32, %arg2: memref<1xf32, #tpu.memory_space<smem>>, %arg3: memref<128x256xf32, #tpu.memory_space<vmem>>, %arg4: memref<1x128xf32, #tpu.memory_space<vmem>>, %arg5: memref<1x128xf32, #tpu.memory_space<vmem>>) attributes {dimension_semantics = [#tpu.dimension_semantics<parallel>, #tpu.dimension_semantics<arbitrary>], iteration_bounds = array<i64: 1, 1>, scalar_prefetch = 0 : i64, scratch_operands = 1 : i64, tpu.core_type = #tpu.core_type<tc>, window_params = [{transform_indices = @transform_0, window_bounds = array<i64: 1>}, {transform_indices = @transform_1, window_bounds = array<i64: 128, 256>}, {transform_indices = @transform_2, window_bounds = array<i64: 1, 128>}]} {
    %c0_i32 = arith.constant 0 : i32
    %0 = arith.cmpi eq, %arg1, %c0_i32 : i32
    %1 = arith.extui %0 : i1 to i32
    %c0_i32_0 = arith.constant 0 : i32
    %2 = arith.cmpi ne, %1, %c0_i32_0 : i32
    scf.if %2 {
      %cst_9 = arith.constant 0.000000e+00 : f32
      %16 = vector.broadcast %cst_9 : f32 to vector<1x128xf32>
      %c0_10 = arith.constant 0 : index
      %c0_11 = arith.constant 0 : index
      %17 = vector.load %arg5[%c0_10, %c0_11] : memref<1x128xf32, #tpu.memory_space<vmem>>, vector<1x128xf32>
      tpu.vector_store %arg5[%c0_10, %c0_11], %16 {strides = array<i32>} : memref<1x128xf32, #tpu.memory_space<vmem>>, vector<1x128xf32>,
    } else {
    }
    %c0 = arith.constant 0 : index
    %c0_1 = arith.constant 0 : index
    %3 = vector.load %arg3[%c0, %c0_1] : memref<128x256xf32, #tpu.memory_space<vmem>>, vector<128x256xf32>
    %4 = vector.shape_cast %3 : vector<128x256xf32> to vector<1x128x256xf32>
    %cst = arith.constant 9.99999997E-7 : f32
    %5 = vector.broadcast %cst : f32 to vector<1x128x256xf32>
    %6 = arith.maximumf %4, %5 : vector<1x128x256xf32>
    %7 = arith.mulf %6, %6 : vector<1x128x256xf32>
    %8 = arith.mulf %6, %7 : vector<1x128x256xf32>
    %c0_2 = arith.constant 0 : index
    %c0_3 = arith.constant 0 : index
    %9 = vector.load %arg5[%c0_2, %c0_3] : memref<1x128xf32, #tpu.memory_space<vmem>>, vector<1x128xf32>
    %cst_4 = arith.constant dense<0.000000e+00> : vector<1x128xf32>
    %10 = vector.multi_reduction <add>, %8, %cst_4 [2] : vector<1x128x256xf32> to vector<1x128xf32>
    %11 = arith.addf %9, %10 : vector<1x128xf32>
    %c0_5 = arith.constant 0 : index
    %c0_6 = arith.constant 0 : index
    %12 = vector.load %arg5[%c0_5, %c0_6] : memref<1x128xf32, #tpu.memory_space<vmem>>, vector<1x128xf32>
    tpu.vector_store %arg5[%c0_5, %c0_6], %11 {strides = array<i32>} : memref<1x128xf32, #tpu.memory_space<vmem>>, vector<1x128xf32>,
    %c0_i32_7 = arith.constant 0 : i32
    %13 = arith.cmpi eq, %arg1, %c0_i32_7 : i32
    %14 = arith.extui %13 : i1 to i32
    %c0_i32_8 = arith.constant 0 : i32
    %15 = arith.cmpi ne, %14, %c0_i32_8 : i32
    scf.if %15 {
      %c0_9 = arith.constant 0 : index
      %c0_10 = arith.constant 0 : index
      %16 = vector.load %arg5[%c0_9, %c0_10] : memref<1x128xf32, #tpu.memory_space<vmem>>, vector<1x128xf32>
      %17 = math.log %16 : vector<1x128xf32>
      %cst_11 = arith.constant 5.54517746 : f32
      %18 = vector.broadcast %cst_11 : f32 to vector<1x128xf32>
      %19 = arith.subf %17, %18 : vector<1x128xf32>
      %cst_12 = arith.constant 0.333333343 : f32
      %20 = vector.broadcast %cst_12 : f32 to vector<1x128xf32>
      %21 = arith.mulf %19, %20 : vector<1x128xf32>
      %22 = math.exp %21 : vector<1x128xf32>
      %c0_13 = arith.constant 0 : index
      %c0_14 = arith.constant 0 : index
      %23 = vector.load %arg4[%c0_13, %c0_14] : memref<1x128xf32, #tpu.memory_space<vmem>>, vector<1x128xf32>
      tpu.vector_store %arg4[%c0_13, %c0_14], %22 {strides = array<i32>} : memref<1x128xf32, #tpu.memory_space<vmem>>, vector<1x128xf32>,
    } else {
    }
    return
  }
  func.func @transform_0(%arg0: i32, %arg1: i32) -> i32 {
    %c0_i32 = arith.constant 0 : i32
    %c0_i32_0 = arith.constant 0 : i32
    return %c0_i32 : i32
  }
  func.func @transform_1(%arg0: i32, %arg1: i32) -> (i32, i32) {
    %c0_i32 = arith.constant 0 : i32
    return %arg0, %arg1 : i32, i32
  }
  func.func @transform_2(%arg0: i32, %arg1: i32) -> (i32, i32) {
    %c0_i32 = arith.constant 0 : i32
    %c0_i32_0 = arith.constant 0 : i32
    return %arg0, %c0_i32 : i32, i32
  }
}

</mosaic_0001>

<bundles_post_ra>
// kernel: tpu_custom_call.1
= control target key start
LH: loop header
LB: loop body
LE: loop exit
PB: predicated region body
PF: predicated region fallthrough
CT: control target
= control target key end

     0   :  { %8 = vsyncpa [#allocation5], 0  ;;  %s2152_s0 = inlined_call_operand.<no memory space> [shape: f32[1], index: 0, kind: input, shape index: {}]   ;;  %s2153_s1 = inlined_call_operand.hbm [shape: f32[128,256], index: 1, kind: input, shape index: {}]   ;;  %s2154_s2 = inlined_call_operand.hbm [shape: f32[1,128], index: 2, kind: output, shape index: {}]  }
   0x1   :  { %9 = vsyncpa [#allocation6], 0  ;;  %s1785_s9 = smov [#allocation4]   ;;  %s1737_s13 = scalar_lea.hbm %s2153_s1, 4096 }
   0x2   :  { %s17_s10 = sshll.u32 %s1785_s9, 4  ;;  %p1738_p0 = scmp.ne.s32.totalorder %s2153_s1, %s1737_s13  ;;  %s18_s10 = int_to_ptr.vmem [resolvable:$true] %s17_s10 }
   0x3   :  { %p1741_p1 = scmp.lt.u32.totalorder %s1737_s13, %s2153_s1 }
   0x5   :  { %p1743_p2 = pnand %p1741_p1, %p1738_p0 }
   0x7   :  { %1746 = shalt.err (!%p1743_p2)
}
   0x8   :  { %s1747_s17 = scalar_lea.vmem %s18_s10, 4096  ;;  %p1752_p4 = scmp.lt.s32.totalorder %s18_s10, %s18_s10 }
   0x9   :  { %p1748_p3 = scmp.ne.s32.totalorder %s18_s10, %s1747_s17  ;;  %p1753_p5 = scmp.lt.s32.totalorder %s1747_s17, %s1747_s17 }
   0xb   :  { %p1754_p6 = por %p1753_p5, %p1752_p4 }
   0xd   :  { %p1755_p7 = pnand %p1754_p6, %p1748_p3 }
   0xf   :  { %1758 = shalt.err (!%p1755_p7)
}
  0x10   :  { %s1786_s18 = smov 256   ;;  %s1787_s19 = smov 16  }
  0x11   :  { %23 = dma.hbm_to_vmem [thread:$0]  %s2153_s1, 4096, %s18_s10, [#allocation5], %s1786_s18, %s1786_s18, %s1787_s19  }
  0x12   :  { %1781 = dma.done.wait [#allocation5], 4096  }
  0x13   :  { %1782 = vsyncadd [#allocation5], 4294963200  ;;  %v32_v0 = vld [vmem:[#allocation4] sm:$0xff]  ;;  %v33_v1 = vld [vmem:[#allocation4 + $0x8] sm:$0xff]  ;;  %vm1580_vm0 = vcmask 130112   ;;  %vm1587_vm1 = vcmask 195712  }
  0x14   :  { %v36_v2 = vld [vmem:[#allocation4 + $0x20] sm:$0xff]  ;;  %v64_v3 = vmax.f32 %v32_v0, 1e-06  ;;  %v65_v4 = vmax.f32 %v33_v1, 1e-06  ;;  %v37_v5 = vld [vmem:[#allocation4 + $0x28] sm:$0xff] }
  0x15   :  { %v34_v6 = vld [vmem:[#allocation4 + $0x10] sm:$0xff]  ;;  %v68_v7 = vmax.f32 %v36_v2, 1e-06  ;;  %v69_v8 = vmax.f32 %v37_v5, 1e-06  ;;  %v35_v9 = vld [vmem:[#allocation4 + $0x18] sm:$0xff] }
  0x16   :  { %v38_v10 = vld [vmem:[#allocation4 + $0x30] sm:$0xff]  ;;  %v96_v11 = vmul.f32 %v64_v3, %v64_v3  ;;  %v97_v12 = vmul.f32 %v65_v4, %v65_v4  ;;  %v66_v13 = vmax.f32 %v34_v6, 1e-06  ;;  %v67_v14 = vmax.f32 %v35_v9, 1e-06  ;;  %v39_v15 = vld [vmem:[#allocation4 + $0x38] sm:$0xff] }
  0x17   :  { %v100_v16 = vmul.f32 %v68_v7, %v68_v7  ;;  %v101_v17 = vmul.f32 %v69_v8, %v69_v8  ;;  %v70_v18 = vmax.f32 %v38_v10, 1e-06  ;;  %v71_v19 = vmax.f32 %v39_v15, 1e-06  ;;  %v42_v20 = vld [vmem:[#allocation4 + $0x50] sm:$0xff]  ;;  %v43_v25 = vld [vmem:[#allocation4 + $0x58] sm:$0xff] }
  0x18   :  { %v128_v21 = vmul.f32 %v96_v11, %v64_v3  ;;  %v129_v22 = vmul.f32 %v97_v12, %v65_v4  ;;  %v98_v23 = vmul.f32 %v66_v13, %v66_v13  ;;  %v99_v24 = vmul.f32 %v67_v14, %v67_v14  ;;  %v46_v30 = vld [vmem:[#allocation4 + $0x70] sm:$0xff]  ;;  %v47_v31 = vld [vmem:[#allocation4 + $0x78] sm:$0xff]  ;;  %v40_v36 = vld [vmem:[#allocation4 + $0x40] sm:$0xff]  ;;  %s1791_s1 = smov [#allocation7]  }
  0x19   :  { %v132_v26 = vmul.f32 %v100_v16, %v68_v7  ;;  %v133_v27 = vmul.f32 %v101_v17, %v69_v8  ;;  %v102_v28 = vmul.f32 %v70_v18, %v70_v18  ;;  %v103_v29 = vmul.f32 %v71_v19, %v71_v19  ;;  %v41_v37 = vld [vmem:[#allocation4 + $0x48] sm:$0xff]  ;;  %v50_v42 = vld [vmem:[#allocation4 + $0x90] sm:$0xff]  ;;  %v51_v47 = vld [vmem:[#allocation4 + $0x98] sm:$0xff]  ;;  %s1714_s22 = sshll.u32 %s1791_s1, 4  ;;  %s1715_s22 = int_to_ptr.vmem [resolvable:$true] %s1714_s22 }
  0x1a   :  { %v161_v32 = vadd.f32 %v129_v22, %v128_v21  ;;  %v130_v33 = vmul.f32 %v98_v23, %v66_v13  ;;  %v131_v34 = vmul.f32 %v99_v24, %v67_v14  ;;  %v74_v35 = vmax.f32 %v42_v20, 1e-06  ;;  %v54_v52 = vld [vmem:[#allocation4 + $0xb0] sm:$0xff]  ;;  %v55_v61 = vld [vmem:[#allocation4 + $0xb8] sm:$0xff]  ;;  %v44_v2 = vld [vmem:[#allocation4 + $0x60] sm:$0xff]  ;;  %s1759_s23 = scalar_lea.vmem %s1715_s22, 16  ;;  %p1764_p9 = scmp.lt.s32.totalorder %s1715_s22, %s1715_s22 }
  0x1b   :  { %v167_v38 = vadd.f32 %v133_v27, %v132_v26  ;;  %v134_v39 = vmul.f32 %v102_v28, %v70_v18  ;;  %v135_v40 = vmul.f32 %v103_v29, %v71_v19  ;;  %v75_v41 = vmax.f32 %v43_v25, 1e-06  ;;  %v45_v3 = vld [vmem:[#allocation4 + $0x68] sm:$0xff]  ;;  %v58_v8 = vld [vmem:[#allocation4 + $0xd0] sm:$0xff]  ;;  %v59_v9 = vld [vmem:[#allocation4 + $0xd8] sm:$0xff]  ;;  %p1760_p8 = scmp.ne.s32.totalorder %s1715_s22, %s1759_s23  ;;  %s1763_s24 = scalar_lea.vmem %s1715_s22, 32 }
  0x1c   :  { %162 = vadd.xlane.f32.xlu0 %v161_v32  ;;  %v164_v43 = vadd.f32 %v131_v34, %v130_v33  ;;  %v106_v44 = vmul.f32 %v74_v35, %v74_v35  ;;  %v78_v45 = vmax.f32 %v46_v30, 1e-06  ;;  %v79_v46 = vmax.f32 %v47_v31, 1e-06  ;;  %v62_v13 = vld [vmem:[#allocation4 + $0xf0] sm:$0xff]  ;;  %v48_v22 = vld [vmem:[#allocation4 + $0x80] sm:$0xff]  ;;  %p1765_p10 = scmp.lt.s32.totalorder %s1763_s24, %s1759_s23 }
  0x1d   :  { %168 = vadd.xlane.f32.xlu1 %v167_v38  ;;  %v170_v48 = vadd.f32 %v135_v40, %v134_v39  ;;  %v107_v49 = vmul.f32 %v75_v41, %v75_v41  ;;  %v72_v50 = vmax.f32 %v40_v36, 1e-06  ;;  %v73_v51 = vmax.f32 %v41_v37, 1e-06  ;;  %v63_v26 = vld [vmem:[#allocation4 + $0xf8] sm:$0xff]  ;;  %v49_v31 = vld [vmem:[#allocation4 + $0x88] sm:$0xff] }
  0x1e   :  { %v138_v53 = vmul.f32 %v106_v44, %v74_v35  ;;  %v110_v54 = vmul.f32 %v78_v45, %v78_v45  ;;  %v111_v55 = vmul.f32 %v79_v46, %v79_v46  ;;  %v82_v56 = vmax.f32 %v50_v42, 1e-06  ;;  %v52_v35 = vld [vmem:[#allocation4 + $0xa0] sm:$0xff]  ;;  %v53_v36 = vld [vmem:[#allocation4 + $0xa8] sm:$0xff]  ;;  %p1766_p11 = por %p1765_p10, %p1764_p9 }
  0x1f   :  { %v139_v57 = vmul.f32 %v107_v49, %v75_v41  ;;  %v104_v58 = vmul.f32 %v72_v50, %v72_v50  ;;  %v105_v59 = vmul.f32 %v73_v51, %v73_v51  ;;  %v83_v60 = vmax.f32 %v51_v47, 1e-06  ;;  %v56_v40 = vld [vmem:[#allocation4 + $0xc0] sm:$0xff]  ;;  %v57_v41 = vld [vmem:[#allocation4 + $0xc8] sm:$0xff] }
  0x20   :  { %165 = vadd.xlane.f32.xlu0 %v164_v43  ;;  %v142_v62 = vmul.f32 %v110_v54, %v78_v45  ;;  %v143_v63 = vmul.f32 %v111_v55, %v79_v46  ;;  %v114_v0 = vmul.f32 %v82_v56, %v82_v56  ;;  %v86_v1 = vmax.f32 %v54_v52, 1e-06  ;;  %v60_v46 = vld [vmem:[#allocation4 + $0xe0] sm:$0xff]  ;;  %p1767_p12 = pnand %p1766_p11, %p1760_p8 }
  0x21   :  { %171 = vadd.xlane.f32.xlu1 %v170_v48  ;;  %v176_v4 = vadd.f32 %v139_v57, %v138_v53  ;;  %v136_v5 = vmul.f32 %v104_v58, %v72_v50  ;;  %v137_v6 = vmul.f32 %v105_v59, %v73_v51  ;;  %v115_v7 = vmul.f32 %v83_v60, %v83_v60  ;;  %v61_v51 = vld [vmem:[#allocation4 + $0xe8] sm:$0xff] }
  0x22   :  { %v182_v10 = vadd.f32 %v143_v63, %v142_v62  ;;  %v87_v11 = vmax.f32 %v55_v61, 1e-06  ;;  %v118_v12 = vmul.f32 %v86_v1, %v86_v1  ;;  %v146_v15 = vmul.f32 %v114_v0, %v82_v56 }
  0x23   :  { %v173_v14 = vadd.f32 %v137_v6, %v136_v5  ;;  %v76_v16 = vmax.f32 %v44_v2, 1e-06  ;;  %v77_v17 = vmax.f32 %v45_v3, 1e-06  ;;  %v147_v18 = vmul.f32 %v115_v7, %v83_v60 }
  0x24   :  { %v119_v19 = vmul.f32 %v87_v11, %v87_v11  ;;  %v90_v20 = vmax.f32 %v58_v8, 1e-06  ;;  %v91_v21 = vmax.f32 %v59_v9, 1e-06  ;;  %v150_v23 = vmul.f32 %v118_v12, %v86_v1 }
  0x25   :  { %177 = vadd.xlane.f32.xlu1 %v176_v4  ;;  %174 = vadd.xlane.f32.xlu0 %v173_v14  ;;  %v108_v24 = vmul.f32 %v76_v16, %v76_v16  ;;  %v109_v25 = vmul.f32 %v77_v17, %v77_v17  ;;  %v94_v27 = vmax.f32 %v62_v13, 1e-06  ;;  %v80_v34 = vmax.f32 %v48_v22, 1e-06 }
  0x26   :  { %v151_v28 = vmul.f32 %v119_v19, %v87_v11  ;;  %v122_v29 = vmul.f32 %v90_v20, %v90_v20  ;;  %v123_v30 = vmul.f32 %v91_v21, %v91_v21  ;;  %v188_v37 = vadd.f32 %v147_v18, %v146_v15 }
  0x27   :  { %v140_v32 = vmul.f32 %v108_v24, %v76_v16  ;;  %v141_v33 = vmul.f32 %v109_v25, %v77_v17  ;;  %v95_v38 = vmax.f32 %v63_v26, 1e-06  ;;  %v126_v39 = vmul.f32 %v94_v27, %v94_v27 }
  0x28   :  { %v194_v42 = vadd.f32 %v151_v28, %v150_v23  ;;  %v81_v44 = vmax.f32 %v49_v31, 1e-06  ;;  %v112_v45 = vmul.f32 %v80_v34, %v80_v34  ;;  %v154_v47 = vmul.f32 %v122_v29, %v90_v20 }
  0x29   :  { %183 = vadd.xlane.f32.xlu1 %v182_v10  ;;  %v179_v43 = vadd.f32 %v141_v33, %v140_v32  ;;  %v155_v48 = vmul.f32 %v123_v30, %v91_v21  ;;  %v84_v49 = vmax.f32 %v52_v35, 1e-06  ;;  %v85_v50 = vmax.f32 %v53_v36, 1e-06 }
  0x2a   :  { %v113_v52 = vmul.f32 %v81_v44, %v81_v44  ;;  %v144_v53 = vmul.f32 %v112_v45, %v80_v34  ;;  %v88_v54 = vmax.f32 %v56_v40, 1e-06  ;;  %v89_v55 = vmax.f32 %v57_v41, 1e-06 }
  0x2b   :  { %180 = vadd.xlane.f32.xlu0 %v179_v43  ;;  %v127_v56 = vmul.f32 %v95_v38, %v95_v38  ;;  %v116_v57 = vmul.f32 %v84_v49, %v84_v49  ;;  %v117_v58 = vmul.f32 %v85_v50, %v85_v50  ;;  %v92_v59 = vmax.f32 %v60_v46, 1e-06 }
  0x2c   :  { %v145_v60 = vmul.f32 %v113_v52, %v81_v44  ;;  %v120_v61 = vmul.f32 %v88_v54, %v88_v54  ;;  %v121_v62 = vmul.f32 %v89_v55, %v89_v55  ;;  %v93_v63 = vmax.f32 %v61_v51, 1e-06 }
  0x2d   :  { %189 = vadd.xlane.f32.xlu1 %v188_v37  ;;  %v148_v0 = vmul.f32 %v116_v57, %v84_v49  ;;  %v149_v1 = vmul.f32 %v117_v58, %v85_v50  ;;  %v158_v2 = vmul.f32 %v126_v39, %v94_v27  ;;  %v200_v4 = vadd.f32 %v155_v48, %v154_v47 }
  0x2e   :  { %v185_v3 = vadd.f32 %v145_v60, %v144_v53  ;;  %v159_v5 = vmul.f32 %v127_v56, %v95_v38  ;;  %v152_v6 = vmul.f32 %v120_v61, %v88_v54  ;;  %v124_v7 = vmul.f32 %v92_v59, %v92_v59 }
  0x2f   :  { %v191_v8 = vadd.f32 %v149_v1, %v148_v0  ;;  %v153_v9 = vmul.f32 %v121_v62, %v89_v55  ;;  %v125_v10 = vmul.f32 %v93_v63, %v93_v63  ;;  %v1788_v11 = vmov 0  }
  0x30   :  { %186 = vadd.xlane.f32.xlu0 %v185_v3  ;;  %1732 = vset.pattern.permute.xlu1 %v1788_v11  ;;  %v206_v12 = vadd.f32 %v159_v5, %v158_v2  ;;  %v156_v14 = vmul.f32 %v124_v7, %v92_v59  ;;  %v225_v17 = vlaneseq  ;;  %v1789_v18 = vmov 1966171168  }
  0x31   :  { %195 = vadd.xlane.f32.xlu1 %v194_v42  ;;  %1731 = vset.pattern.permute.xlu0 %v1788_v11  ;;  %v197_v13 = vadd.f32 %v153_v9, %v152_v6  ;;  %v157_v15 = vmul.f32 %v125_v10, %v93_v63  ;;  %v742_v19 = vunpack.c.l.s4 %v1789_v18  ;;  %vm1594_vm2 = vcmask 261312  }
  0x32   :  { %v1820_v20 = vshrl.u32 %v225_v17, 7  ;;  %vm1601_vm3 = vcmask 326912   ;;  %vm1608_vm4 = vcmask 392512   ;;  %vm1615_vm5 = vcmask 458112  }
  0x33   :  { %v203_v16 = vadd.f32 %v157_v15, %v156_v14  ;;  %v743_v21 = vunpack.c.0.s8 %v742_v19  ;;  %vm1622_vm6 = vcmask 523712   ;;  %vm1629_vm7 = vcmask 589312  }
  0x34   :  { %192 = vadd.xlane.f32.xlu0 %v191_v8  ;;  %v1823_v22 = vsub.s32 0, %v1820_v20  ;;  %v1826_v23 = vsub.s32 1, %v1820_v20  ;;  %v1829_v24 = vsub.s32 2, %v1820_v20  ;;  %v1832_v25 = vsub.s32 3, %v1820_v20 }
  0x35   :  { %201 = vadd.xlane.f32.xlu1 %v200_v4  ;;  %v1835_v26 = vsub.s32 4, %v1820_v20  ;;  %v1838_v27 = vsub.s32 5, %v1820_v20  ;;  %v1841_v28 = vsub.s32 6, %v1820_v20  ;;  %v1844_v29 = vsub.s32 7, %v1820_v20 }
  0x36   :  { %v1847_v31 = vsub.s32 %v743_v21, %v1820_v20  ;;  %vm1636_vm8 = vcmask 654912   ;;  %vm1643_vm9 = vcmask 720512   ;;  %vm1650_vm10 = vcmask 786112  }
  0x37   :  { %vm1657_vm11 = vcmask 851712   ;;  %vm1664_vm12 = vcmask 917312   ;;  %vm1671_vm13 = vcmask 982912   ;;  %vm1678_vm14 = vcmask 1048512  }
  0x38   :  { %198 = vadd.xlane.f32.xlu0 %v197_v13 }
  0x39   :  { %207 = vadd.xlane.f32.xlu1 %v206_v12 }
  0x3c   :  { %204 = vadd.xlane.f32.xlu0 %v203_v16 }
  0xa9   :  { %v163_v30 = vpop.xlane.xlu0 %162 }
  0xaa   :  { %v169_v32 = vpop.xlane.xlu1 %168  ;;  %v228_v33 = vrot.slane %v163_v30, %v1823_v22  ;;  %v232_v34 = vrot.slane %v163_v30, %v1826_v23  ;;  %v236_v35 = vrot.slane %v163_v30, %v1829_v24  ;;  %v240_v36 = vrot.slane %v163_v30, %v1832_v25 }
  0xab   :  { %v244_v37 = vrot.slane %v163_v30, %v1835_v26  ;;  %v248_v38 = vrot.slane %v163_v30, %v1838_v27  ;;  %v252_v39 = vrot.slane %v163_v30, %v1841_v28  ;;  %v256_v40 = vrot.slane %v163_v30, %v1844_v29 }
  0xac   :  { %v737_v41 = vcombine.low %v228_v33, %v232_v34  ;;  %v738_v42 = vcombine.low %v236_v35, %v240_v36  ;;  %v292_v43 = vrot.slane %v169_v32, %v1823_v22  ;;  %v296_v44 = vrot.slane %v169_v32, %v1826_v23 }
  0xad   :  { %v166_v45 = vpop.xlane.xlu0 %165  ;;  %v739_v46 = vcombine.low %v244_v37, %v248_v38  ;;  %v740_v47 = vcombine.low %v252_v39, %v256_v40  ;;  %v300_v48 = vrot.slane %v169_v32, %v1829_v24  ;;  %v304_v49 = vrot.slane %v169_v32, %v1832_v25 }
  0xae   :  { %v1861_v50 = vpop.xlane.xlu1 %171  ;;  %v747_v51 = vrot.slane %v737_v41, %v1847_v31  ;;  %v754_v52 = vrot.slane %v738_v42, %v1847_v31  ;;  %v260_v53 = vrot.slane %v166_v45, %v1823_v22  ;;  %v264_v54 = vrot.slane %v166_v45, %v1826_v23 }
  0xaf   :  { %v761_v55 = vrot.slane %v739_v46, %v1847_v31  ;;  %v768_v56 = vrot.slane %v740_v47, %v1847_v31  ;;  %v268_v57 = vrot.slane %v166_v45, %v1829_v24  ;;  %v272_v58 = vrot.slane %v166_v45, %v1832_v25 }
  0xb0   :  { %v769_v59 = vcombine.low %v747_v51, %v754_v52  ;;  %v276_v60 = vrot.slane %v166_v45, %v1835_v26  ;;  %v280_v61 = vrot.slane %v166_v45, %v1838_v27  ;;  %v284_v62 = vrot.slane %v166_v45, %v1841_v28 }
  0xb1   :  { %v770_v63 = vcombine.low %v761_v55, %v768_v56  ;;  %v288_v0 = vrot.slane %v166_v45, %v1844_v29  ;;  %v786_v1 = vcombine.low %v260_v53, %v264_v54  ;;  %v787_v2 = vcombine.low %v268_v57, %v272_v58 }
  0xb2   :  { %v1875_v3 = vpop.xlane.xlu1 %177  ;;  %v777_v4 = vrot.slane %v769_v59, %v1847_v31  ;;  %v788_v5 = vcombine.low %v276_v60, %v280_v61  ;;  %v308_v6 = vrot.slane %v169_v32, %v1835_v26  ;;  %v312_v7 = vrot.slane %v169_v32, %v1838_v27 }
  0xb3   :  { %v784_v8 = vrot.slane %v770_v63, %v1847_v31  ;;  %v789_v9 = vcombine.low %v284_v62, %v288_v0  ;;  %v796_v10 = vrot.slane %v786_v1, %v1847_v31  ;;  %v803_v11 = vrot.slane %v787_v2, %v1847_v31 }
  0xb4   :  { %v810_v12 = vrot.slane %v788_v5, %v1847_v31  ;;  %v316_v13 = vrot.slane %v169_v32, %v1841_v28  ;;  %v320_v14 = vrot.slane %v169_v32, %v1844_v29  ;;  %v835_v15 = vcombine.low %v292_v43, %v296_v44  ;;  %v175_v44 = vpop.xlane.xlu0 %174 }
  0xb5   :  { %v785_v16 = vcombine.low %v777_v4, %v784_v8  ;;  %v817_v18 = vrot.slane %v789_v9, %v1847_v31  ;;  %v818_v19 = vcombine.low %v796_v10, %v803_v11  ;;  %v836_v21 = vcombine.low %v300_v48, %v304_v49 }
  0xb6   :  { %v837_v30 = vcombine.low %v308_v6, %v312_v7  ;;  %v838_v33 = vcombine.low %v316_v13, %v320_v14  ;;  %v845_v34 = vrot.slane %v835_v15, %v1847_v31  ;;  %v324_v35 = vrot.slane %v1861_v50, %v1823_v22  ;;  %v1890_v36 = vpop.xlane.xlu1 %183 }
  0xb7   :  { %1522 = vperm.xlu0 %1731, %v785_v16   ;;  %v819_v37 = vcombine.low %v810_v12, %v817_v18  ;;  %v826_v38 = vrot.slane %v818_v19, %v1847_v31  ;;  %v852_v32 = vrot.slane %v836_v21, %v1847_v31  ;;  %v328_v39 = vrot.slane %v1861_v50, %v1826_v23 }
  0xb8   :  { %v859_v40 = vrot.slane %v837_v30, %v1847_v31  ;;  %v866_v41 = vrot.slane %v838_v33, %v1847_v31  ;;  %v332_v42 = vrot.slane %v1861_v50, %v1829_v24  ;;  %v336_v43 = vrot.slane %v1861_v50, %v1832_v25 }
  0xb9   :  { %v833_v45 = vrot.slane %v819_v37, %v1847_v31  ;;  %v867_v46 = vcombine.low %v845_v34, %v852_v32  ;;  %v340_v47 = vrot.slane %v1861_v50, %v1835_v26  ;;  %v344_v48 = vrot.slane %v1861_v50, %v1838_v27 }
  0xba   :  { %v868_v49 = vcombine.low %v859_v40, %v866_v41  ;;  %v348_v51 = vrot.slane %v1861_v50, %v1841_v28  ;;  %v352_v52 = vrot.slane %v1861_v50, %v1844_v29  ;;  %v884_v53 = vcombine.low %v324_v35, %v328_v39  ;;  %v190_v62 = vpop.xlane.xlu1 %189 }
  0xbb   :  { %v834_v54 = vcombine.low %v826_v38, %v833_v45  ;;  %v875_v55 = vrot.slane %v867_v46, %v1847_v31  ;;  %v885_v56 = vcombine.low %v332_v42, %v336_v43  ;;  %v886_v57 = vcombine.low %v340_v47, %v344_v48 }
  0xbc   :  { %v882_v58 = vrot.slane %v868_v49, %v1847_v31  ;;  %v887_v59 = vcombine.low %v348_v51, %v352_v52  ;;  %v894_v60 = vrot.slane %v884_v53, %v1847_v31  ;;  %v356_v61 = vrot.slane %v175_v44, %v1823_v22 }
  0xbd   :  { %1525 = vperm.xlu1 %1732, %v834_v54   ;;  %v901_v63 = vrot.slane %v885_v56, %v1847_v31  ;;  %v908_v0 = vrot.slane %v886_v57, %v1847_v31  ;;  %v360_v50 = vrot.slane %v175_v44, %v1826_v23  ;;  %v364_v1 = vrot.slane %v175_v44, %v1829_v24 }
  0xbe   :  { %v883_v2 = vcombine.low %v875_v55, %v882_v58  ;;  %v915_v4 = vrot.slane %v887_v59, %v1847_v31  ;;  %v368_v5 = vrot.slane %v175_v44, %v1832_v25  ;;  %v372_v6 = vrot.slane %v175_v44, %v1835_v26  ;;  %v196_v56 = vpop.xlane.xlu1 %195 }
  0xbf   :  { %v916_v7 = vcombine.low %v894_v60, %v901_v63  ;;  %v376_v8 = vrot.slane %v175_v44, %v1838_v27  ;;  %v380_v9 = vrot.slane %v175_v44, %v1841_v28  ;;  %v384_v10 = vrot.slane %v175_v44, %v1844_v29 }
  0xc0   :  { %v917_v11 = vcombine.low %v908_v0, %v915_v4  ;;  %v933_v12 = vcombine.low %v356_v61, %v360_v50  ;;  %v934_v13 = vcombine.low %v364_v1, %v368_v5  ;;  %v516_v14 = vrot.slane %v190_v62, %v1823_v22 }
  0xc1   :  { %1528 = vperm.xlu1 %1732, %v883_v2   ;;  %v924_v15 = vrot.slane %v916_v7, %v1847_v31  ;;  %v935_v16 = vcombine.low %v372_v6, %v376_v8  ;;  %v936_v18 = vcombine.low %v380_v9, %v384_v10  ;;  %v520_v19 = vrot.slane %v190_v62, %v1826_v23 }
  0xc2   :  { %v931_v21 = vrot.slane %v917_v11, %v1847_v31  ;;  %v943_v30 = vrot.slane %v933_v12, %v1847_v31  ;;  %v950_v33 = vrot.slane %v934_v13, %v1847_v31  ;;  %v524_v34 = vrot.slane %v190_v62, %v1829_v24 }
  0xc3   :  { %v957_v35 = vrot.slane %v935_v16, %v1847_v31  ;;  %v964_v37 = vrot.slane %v936_v18, %v1847_v31  ;;  %v528_v38 = vrot.slane %v190_v62, %v1832_v25  ;;  %v532_v32 = vrot.slane %v190_v62, %v1835_v26  ;;  %v181_v16 = vpop.xlane.xlu0 %180 }
  0xc4   :  { %v932_v39 = vcombine.low %v924_v15, %v931_v21  ;;  %v965_v40 = vcombine.low %v943_v30, %v950_v33  ;;  %v536_v41 = vrot.slane %v190_v62, %v1838_v27  ;;  %v540_v42 = vrot.slane %v190_v62, %v1841_v28 }
  0xc5   :  { %v966_v43 = vcombine.low %v957_v35, %v964_v37  ;;  %v544_v44 = vrot.slane %v190_v62, %v1844_v29  ;;  %v1178_v45 = vcombine.low %v516_v14, %v520_v19  ;;  %v1179_v46 = vcombine.low %v524_v34, %v528_v38 }
  0xc6   :  { %1531 = vperm.xlu1 %1732, %v932_v39   ;;  %v973_v47 = vrot.slane %v965_v40, %v1847_v31  ;;  %v1180_v48 = vcombine.low %v532_v32, %v536_v41  ;;  %v388_v49 = vrot.slane %v1875_v3, %v1823_v22  ;;  %v392_v51 = vrot.slane %v1875_v3, %v1826_v23 }
  0xc7   :  { %v980_v52 = vrot.slane %v966_v43, %v1847_v31  ;;  %v1181_v53 = vcombine.low %v540_v42, %v544_v44  ;;  %v1188_v54 = vrot.slane %v1178_v45, %v1847_v31  ;;  %v1195_v55 = vrot.slane %v1179_v46, %v1847_v31 }
  0xc8   :  { %v1202_v57 = vrot.slane %v1180_v48, %v1847_v31  ;;  %v396_v58 = vrot.slane %v1875_v3, %v1829_v24  ;;  %v400_v59 = vrot.slane %v1875_v3, %v1832_v25  ;;  %v404_v60 = vrot.slane %v1875_v3, %v1835_v26 }
  0xc9   :  { %v981_v61 = vcombine.low %v973_v47, %v980_v52  ;;  %v1209_v62 = vrot.slane %v1181_v53, %v1847_v31  ;;  %v1210_v63 = vcombine.low %v1188_v54, %v1195_v55  ;;  %v408_v0 = vrot.slane %v1875_v3, %v1838_v27 }
  0xca   :  { %v412_v50 = vrot.slane %v1875_v3, %v1841_v28  ;;  %v416_v1 = vrot.slane %v1875_v3, %v1844_v29  ;;  %v982_v2 = vcombine.low %v388_v49, %v392_v51  ;;  %v983_v4 = vcombine.low %v396_v58, %v400_v59  ;;  %v202_v49 = vpop.xlane.xlu1 %201 }
  0xcb   :  { %1534 = vperm.xlu1 %1732, %v981_v61   ;;  %v1211_v5 = vcombine.low %v1202_v57, %v1209_v62  ;;  %v1218_v6 = vrot.slane %v1210_v63, %v1847_v31  ;;  %v984_v7 = vcombine.low %v404_v60, %v408_v0  ;;  %v580_v8 = vrot.slane %v196_v56, %v1823_v22 }
  0xcc   :  { %v985_v9 = vcombine.low %v412_v50, %v416_v1  ;;  %v992_v10 = vrot.slane %v982_v2, %v1847_v31  ;;  %v999_v11 = vrot.slane %v983_v4, %v1847_v31  ;;  %v584_v12 = vrot.slane %v196_v56, %v1826_v23 }
  0xcd   :  { %v1225_v13 = vrot.slane %v1211_v5, %v1847_v31  ;;  %v1006_v3 = vrot.slane %v984_v7, %v1847_v31  ;;  %v588_v14 = vrot.slane %v196_v56, %v1829_v24  ;;  %v592_v15 = vrot.slane %v196_v56, %v1832_v25 }
  0xce   :  { %v1013_v18 = vrot.slane %v985_v9, %v1847_v31  ;;  %v1014_v19 = vcombine.low %v992_v10, %v999_v11  ;;  %v596_v21 = vrot.slane %v196_v56, %v1835_v26  ;;  %v600_v30 = vrot.slane %v196_v56, %v1838_v27 }
  0xcf   :  { %v1226_v33 = vcombine.low %v1218_v6, %v1225_v13  ;;  %v604_v34 = vrot.slane %v196_v56, %v1841_v28  ;;  %v608_v35 = vrot.slane %v196_v56, %v1844_v29  ;;  %v1276_v37 = vcombine.low %v580_v8, %v584_v12 }
  0xd0   :  { %v1015_v38 = vcombine.low %v1006_v3, %v1013_v18  ;;  %v1022_v32 = vrot.slane %v1014_v19, %v1847_v31  ;;  %v1277_v39 = vcombine.low %v588_v14, %v592_v15  ;;  %v1278_v40 = vcombine.low %v596_v21, %v600_v30 }
  0xd1   :  { %1549 = vperm.xlu0 %1731, %v1226_v33   ;;  %v1279_v41 = vcombine.low %v604_v34, %v608_v35  ;;  %v1286_v42 = vrot.slane %v1276_v37, %v1847_v31  ;;  %v420_v43 = vrot.slane %v181_v16, %v1823_v22  ;;  %v424_v44 = vrot.slane %v181_v16, %v1826_v23 }
  0xd2   :  { %v1029_v45 = vrot.slane %v1015_v38, %v1847_v31  ;;  %v1293_v46 = vrot.slane %v1277_v39, %v1847_v31  ;;  %v1300_v47 = vrot.slane %v1278_v40, %v1847_v31  ;;  %v428_v48 = vrot.slane %v181_v16, %v1829_v24 }
  0xd3   :  { %v1307_v51 = vrot.slane %v1279_v41, %v1847_v31  ;;  %v432_v52 = vrot.slane %v181_v16, %v1832_v25  ;;  %v436_v53 = vrot.slane %v181_v16, %v1835_v26  ;;  %v440_v54 = vrot.slane %v181_v16, %v1838_v27 }
  0xd4   :  { %v1030_v55 = vcombine.low %v1022_v32, %v1029_v45  ;;  %v1308_v56 = vcombine.low %v1286_v42, %v1293_v46  ;;  %v444_v57 = vrot.slane %v181_v16, %v1841_v28  ;;  %v448_v58 = vrot.slane %v181_v16, %v1844_v29  ;;  %v208_v32 = vpop.xlane.xlu1 %207 }
  0xd5   :  { %v1309_v59 = vcombine.low %v1300_v47, %v1307_v51  ;;  %v1031_v60 = vcombine.low %v420_v43, %v424_v44  ;;  %v1032_v61 = vcombine.low %v428_v48, %v432_v52  ;;  %v1033_v62 = vcombine.low %v436_v53, %v440_v54  ;;  %v187_v52 = vpop.xlane.xlu0 %186 }
  0xd6   :  { %1537 = vperm.xlu1 %1732, %v1030_v55   ;;  %v1316_v63 = vrot.slane %v1308_v56, %v1847_v31  ;;  %v1034_v0 = vcombine.low %v444_v57, %v448_v58  ;;  %v644_v50 = vrot.slane %v202_v49, %v1823_v22  ;;  %v648_v1 = vrot.slane %v202_v49, %v1826_v23 }
  0xd7   :  { %v1323_v2 = vrot.slane %v1309_v59, %v1847_v31  ;;  %v1041_v4 = vrot.slane %v1031_v60, %v1847_v31  ;;  %v1048_v5 = vrot.slane %v1032_v61, %v1847_v31  ;;  %v1055_v6 = vrot.slane %v1033_v62, %v1847_v31 }
  0xd8   :  { %v1062_v7 = vrot.slane %v1034_v0, %v1847_v31  ;;  %v652_v8 = vrot.slane %v202_v49, %v1829_v24  ;;  %v656_v9 = vrot.slane %v202_v49, %v1832_v25  ;;  %v660_v10 = vrot.slane %v202_v49, %v1835_v26 }
  0xd9   :  { %v1324_v11 = vcombine.low %v1316_v63, %v1323_v2  ;;  %v1063_v12 = vcombine.low %v1041_v4, %v1048_v5  ;;  %v664_v13 = vrot.slane %v202_v49, %v1838_v27  ;;  %v668_v3 = vrot.slane %v202_v49, %v1841_v28 }
  0xda   :  { %v1064_v14 = vcombine.low %v1055_v6, %v1062_v7  ;;  %v672_v15 = vrot.slane %v202_v49, %v1844_v29  ;;  %v1374_v16 = vcombine.low %v644_v50, %v648_v1  ;;  %v1375_v18 = vcombine.low %v652_v8, %v656_v9 }
  0xdb   :  { %1555 = vperm.xlu0 %1731, %v1324_v11   ;;  %v1071_v19 = vrot.slane %v1063_v12, %v1847_v31  ;;  %v1376_v21 = vcombine.low %v660_v10, %v664_v13  ;;  %v452_v30 = vrot.slane %v1890_v36, %v1823_v22  ;;  %v456_v33 = vrot.slane %v1890_v36, %v1826_v23  ;;  %v193_v12 = vpop.xlane.xlu0 %192 }
  0xdc   :  { %v1078_v34 = vrot.slane %v1064_v14, %v1847_v31  ;;  %v1377_v35 = vcombine.low %v668_v3, %v672_v15  ;;  %v1384_v37 = vrot.slane %v1374_v16, %v1847_v31  ;;  %v1391_v38 = vrot.slane %v1375_v18, %v1847_v31 }
  0xdd   :  { %v1398_v39 = vrot.slane %v1376_v21, %v1847_v31  ;;  %v460_v40 = vrot.slane %v1890_v36, %v1829_v24  ;;  %v464_v41 = vrot.slane %v1890_v36, %v1832_v25  ;;  %v468_v42 = vrot.slane %v1890_v36, %v1835_v26 }
  0xde   :  { %v1079_v43 = vcombine.low %v1071_v19, %v1078_v34  ;;  %v1405_v44 = vrot.slane %v1377_v35, %v1847_v31  ;;  %v1406_v45 = vcombine.low %v1384_v37, %v1391_v38  ;;  %v472_v46 = vrot.slane %v1890_v36, %v1838_v27 }
  0xdf   :  { %v476_v47 = vrot.slane %v1890_v36, %v1841_v28  ;;  %v480_v48 = vrot.slane %v1890_v36, %v1844_v29  ;;  %v1080_v49 = vcombine.low %v452_v30, %v456_v33  ;;  %v1081_v51 = vcombine.low %v460_v40, %v464_v41 }
  0xe0   :  { %1540 = vperm.xlu1 %1732, %v1079_v43   ;;  %v1407_v53 = vcombine.low %v1398_v39, %v1405_v44  ;;  %v1414_v54 = vrot.slane %v1406_v45, %v1847_v31  ;;  %v1082_v55 = vcombine.low %v468_v42, %v472_v46  ;;  %v708_v56 = vrot.slane %v208_v32, %v1823_v22 }
  0xe1   :  { %v1083_v57 = vcombine.low %v476_v47, %v480_v48  ;;  %v1090_v58 = vrot.slane %v1080_v49, %v1847_v31  ;;  %v1097_v59 = vrot.slane %v1081_v51, %v1847_v31  ;;  %v712_v60 = vrot.slane %v208_v32, %v1826_v23  ;;  %v199_v48 = vpop.xlane.xlu0 %198 }
  0xe2   :  { %v1421_v61 = vrot.slane %v1407_v53, %v1847_v31  ;;  %v1104_v36 = vrot.slane %v1082_v55, %v1847_v31  ;;  %v716_v62 = vrot.slane %v208_v32, %v1829_v24  ;;  %v720_v63 = vrot.slane %v208_v32, %v1832_v25 }
  0xe3   :  { %v1111_v0 = vrot.slane %v1083_v57, %v1847_v31  ;;  %v1112_v50 = vcombine.low %v1090_v58, %v1097_v59  ;;  %v724_v1 = vrot.slane %v208_v32, %v1835_v26  ;;  %v728_v2 = vrot.slane %v208_v32, %v1838_v27 }
  0xe4   :  { %v1422_v4 = vcombine.low %v1414_v54, %v1421_v61  ;;  %v732_v5 = vrot.slane %v208_v32, %v1841_v28  ;;  %v736_v6 = vrot.slane %v208_v32, %v1844_v29  ;;  %v1472_v7 = vcombine.low %v708_v56, %v712_v60 }
  0xe5   :  { %v1113_v8 = vcombine.low %v1104_v36, %v1111_v0  ;;  %v1120_v9 = vrot.slane %v1112_v50, %v1847_v31  ;;  %v1473_v10 = vcombine.low %v716_v62, %v720_v63  ;;  %v1474_v11 = vcombine.low %v724_v1, %v728_v2 }
  0xe6   :  { %1561 = vperm.xlu0 %1731, %v1422_v4   ;;  %v1475_v13 = vcombine.low %v732_v5, %v736_v6  ;;  %v1482_v3 = vrot.slane %v1472_v7, %v1847_v31  ;;  %v484_v14 = vrot.slane %v187_v52, %v1823_v22  ;;  %v488_v15 = vrot.slane %v187_v52, %v1826_v23 }
  0xe7   :  { %v1127_v16 = vrot.slane %v1113_v8, %v1847_v31  ;;  %v1489_v18 = vrot.slane %v1473_v10, %v1847_v31  ;;  %v1496_v19 = vrot.slane %v1474_v11, %v1847_v31  ;;  %v492_v21 = vrot.slane %v187_v52, %v1829_v24 }
  0xe8   :  { %v1503_v30 = vrot.slane %v1475_v13, %v1847_v31  ;;  %v496_v33 = vrot.slane %v187_v52, %v1832_v25  ;;  %v500_v34 = vrot.slane %v187_v52, %v1835_v26  ;;  %v504_v35 = vrot.slane %v187_v52, %v1838_v27 }
  0xe9   :  { %v1128_v37 = vcombine.low %v1120_v9, %v1127_v16  ;;  %v1504_v38 = vcombine.low %v1482_v3, %v1489_v18  ;;  %v508_v32 = vrot.slane %v187_v52, %v1841_v28  ;;  %v512_v39 = vrot.slane %v187_v52, %v1844_v29  ;;  %v205_v9 = vpop.xlane.xlu0 %204 }
  0xea   :  { %v1505_v40 = vcombine.low %v1496_v19, %v1503_v30  ;;  %v1129_v41 = vcombine.low %v484_v14, %v488_v15  ;;  %v1130_v42 = vcombine.low %v492_v21, %v496_v33  ;;  %v1131_v43 = vcombine.low %v500_v34, %v504_v35 }
  0xeb   :  { %1543 = vperm.xlu1 %1732, %v1128_v37   ;;  %v1512_v44 = vrot.slane %v1504_v38, %v1847_v31  ;;  %v1132_v45 = vcombine.low %v508_v32, %v512_v39  ;;  %v548_v46 = vrot.slane %v193_v12, %v1823_v22  ;;  %v552_v47 = vrot.slane %v193_v12, %v1826_v23 }
  0xec   :  { %v1519_v49 = vrot.slane %v1505_v40, %v1847_v31  ;;  %v1139_v51 = vrot.slane %v1129_v41, %v1847_v31  ;;  %v1146_v53 = vrot.slane %v1130_v42, %v1847_v31  ;;  %v1153_v52 = vrot.slane %v1131_v43, %v1847_v31 }
  0xed   :  { %v1160_v54 = vrot.slane %v1132_v45, %v1847_v31  ;;  %v556_v55 = vrot.slane %v193_v12, %v1829_v24  ;;  %v560_v56 = vrot.slane %v193_v12, %v1832_v25  ;;  %v564_v57 = vrot.slane %v193_v12, %v1835_v26 }
  0xee   :  { %v1520_v58 = vcombine.low %v1512_v44, %v1519_v49  ;;  %v1161_v59 = vcombine.low %v1139_v51, %v1146_v53  ;;  %v568_v60 = vrot.slane %v193_v12, %v1838_v27  ;;  %v572_v61 = vrot.slane %v193_v12, %v1841_v28 }
  0xef   :  { %v1162_v36 = vcombine.low %v1153_v52, %v1160_v54  ;;  %v576_v62 = vrot.slane %v193_v12, %v1844_v29  ;;  %v1227_v63 = vcombine.low %v548_v46, %v552_v47  ;;  %v1228_v0 = vcombine.low %v556_v55, %v560_v56 }
  0xf0   :  { %1567 = vperm.xlu0 %1731, %v1520_v58   ;;  %v1169_v50 = vrot.slane %v1161_v59, %v1847_v31  ;;  %v1229_v1 = vcombine.low %v564_v57, %v568_v60  ;;  %v612_v2 = vrot.slane %v199_v48, %v1823_v22  ;;  %v616_v4 = vrot.slane %v199_v48, %v1826_v23 }
  0xf1   :  { %v1176_v5 = vrot.slane %v1162_v36, %v1847_v31  ;;  %v1230_v6 = vcombine.low %v572_v61, %v576_v62  ;;  %v1237_v7 = vrot.slane %v1227_v63, %v1847_v31  ;;  %v1244_v8 = vrot.slane %v1228_v0, %v1847_v31 }
  0xf2   :  { %v1251_v10 = vrot.slane %v1229_v1, %v1847_v31  ;;  %v620_v11 = vrot.slane %v199_v48, %v1829_v24  ;;  %v624_v12 = vrot.slane %v199_v48, %v1832_v25  ;;  %v628_v13 = vrot.slane %v199_v48, %v1835_v26 }
  0xf3   :  { %v1177_v3 = vcombine.low %v1169_v50, %v1176_v5  ;;  %v1258_v14 = vrot.slane %v1230_v6, %v1847_v31  ;;  %v1259_v15 = vcombine.low %v1237_v7, %v1244_v8  ;;  %v632_v16 = vrot.slane %v199_v48, %v1838_v27 }
  0xf4   :  { %v636_v18 = vrot.slane %v199_v48, %v1841_v28  ;;  %v640_v19 = vrot.slane %v199_v48, %v1844_v29  ;;  %v1325_v21 = vcombine.low %v612_v2, %v616_v4  ;;  %v1326_v30 = vcombine.low %v620_v11, %v624_v12 }
  0xf5   :  { %1546 = vperm.xlu1 %1732, %v1177_v3   ;;  %v1260_v33 = vcombine.low %v1251_v10, %v1258_v14  ;;  %v1267_v34 = vrot.slane %v1259_v15, %v1847_v31  ;;  %v1327_v35 = vcombine.low %v628_v13, %v632_v16  ;;  %v676_v37 = vrot.slane %v205_v9, %v1823_v22 }
  0xf6   :  { %v1328_v38 = vcombine.low %v636_v18, %v640_v19  ;;  %v1335_v32 = vrot.slane %v1325_v21, %v1847_v31  ;;  %v1342_v39 = vrot.slane %v1326_v30, %v1847_v31  ;;  %v680_v40 = vrot.slane %v205_v9, %v1826_v23 }
  0xf7   :  { %v1274_v41 = vrot.slane %v1260_v33, %v1847_v31  ;;  %v1349_v42 = vrot.slane %v1327_v35, %v1847_v31  ;;  %v684_v43 = vrot.slane %v205_v9, %v1829_v24  ;;  %v688_v44 = vrot.slane %v205_v9, %v1832_v25 }
  0xf8   :  { %v1356_v45 = vrot.slane %v1328_v38, %v1847_v31  ;;  %v1357_v46 = vcombine.low %v1335_v32, %v1342_v39  ;;  %v692_v22 = vrot.slane %v205_v9, %v1835_v26  ;;  %v696_v47 = vrot.slane %v205_v9, %v1838_v27 }
  0xf9   :  { %v1275_v48 = vcombine.low %v1267_v34, %v1274_v41  ;;  %v700_v49 = vrot.slane %v205_v9, %v1841_v28  ;;  %v704_v23 = vrot.slane %v205_v9, %v1844_v29  ;;  %v1423_v51 = vcombine.low %v676_v37, %v680_v40 }
  0xfa   :  { %v1358_v53 = vcombine.low %v1349_v42, %v1356_v45  ;;  %v1365_v52 = vrot.slane %v1357_v46, %v1847_v31  ;;  %v1424_v54 = vcombine.low %v684_v43, %v688_v44  ;;  %v1425_v24 = vcombine.low %v692_v22, %v696_v47 }
  0xfb   :  { %1552 = vperm.xlu1 %1732, %v1275_v48   ;;  %v1426_v25 = vcombine.low %v700_v49, %v704_v23  ;;  %v1433_v55 = vrot.slane %v1423_v51, %v1847_v31  ;;  %v1790_v36 = vmov 0.0   ;;  %v2104_v2 = vand.u32 127, %v225_v17 }
  0xfc   :  { %v1372_v56 = vrot.slane %v1358_v53, %v1847_v31  ;;  %v1440_v26 = vrot.slane %v1424_v54, %v1847_v31  ;;  %v1447_v27 = vrot.slane %v1425_v24, %v1847_v31  ;;  %31 = vst [vmem:[#allocation2] sm:$0x1] %v1790_v36 }
  0xfd   :  { %v1454_v28 = vrot.slane %v1426_v25, %v1847_v31  ;;  %v1575_v4 = vadd.s32 4294967288, %v2104_v2  ;;  %v1582_v6 = vadd.s32 4294967280, %v2104_v2  ;;  %v1589_v7 = vadd.s32 4294967272, %v2104_v2 }
  0xfe   :  { %v1373_v57 = vcombine.low %v1365_v52, %v1372_v56  ;;  %v1455_v29 = vcombine.low %v1433_v55, %v1440_v26  ;;  %v1596_v8 = vadd.s32 4294967264, %v2104_v2  ;;  %v1603_v10 = vadd.s32 4294967256, %v2104_v2 }
  0xff   :  { %v1456_v58 = vcombine.low %v1447_v27, %v1454_v28  ;;  %v1578_v9 = vsub.s32 %v1575_v4, %v1820_v20  ;;  %v1585_v12 = vsub.s32 %v1582_v6, %v1820_v20  ;;  %v1610_v13 = vadd.s32 4294967248, %v2104_v2 }
 0x100   :  { %1558 = vperm.xlu1 %1732, %v1373_v57   ;;  %v1463_v59 = vrot.slane %v1455_v29, %v1847_v31  ;;  %v1573_v17 = vsub.s32 %v2104_v2, %v1820_v20  ;;  %v1592_v3 = vsub.s32 %v1589_v7, %v1820_v20  ;;  %v1617_v14 = vadd.s32 4294967240, %v2104_v2 }
 0x101   :  { %v1470_v60 = vrot.slane %v1456_v58, %v1847_v31  ;;  %v1599_v16 = vsub.s32 %v1596_v8, %v1820_v20  ;;  %v1624_v18 = vadd.s32 4294967232, %v2104_v2  ;;  %v1606_v21 = vsub.s32 %v1603_v10, %v1820_v20 }
 0x102   :  { %v1613_v34 = vsub.s32 %v1610_v13, %v1820_v20  ;;  %v1620_v38 = vsub.s32 %v1617_v14, %v1820_v20  ;;  %v1638_v40 = vadd.s32 4294967216, %v2104_v2  ;;  %v1631_v42 = vadd.s32 4294967224, %v2104_v2 }
 0x103   :  { %v1471_v61 = vcombine.low %v1463_v59, %v1470_v60  ;;  %v1627_v39 = vsub.s32 %v1624_v18, %v1820_v20  ;;  %v1645_v47 = vadd.s32 4294967208, %v2104_v2  ;;  %v1652_v24 = vadd.s32 4294967200, %v2104_v2  ;;  %v160_v14 = vld [vmem:[#allocation2] sm:$0x1] }
 0x104   :  { %v1641_v53 = vsub.s32 %v1638_v40, %v1820_v20  ;;  %v1634_v52 = vsub.s32 %v1631_v42, %v1820_v20  ;;  %v1659_v26 = vadd.s32 4294967192, %v2104_v2  ;;  %v1666_v60 = vadd.s32 4294967184, %v2104_v2 }
 0x105   :  { %1564 = vperm.xlu1 %1732, %v1471_v61   ;;  %v1648_v29 = vsub.s32 %v1645_v47, %v1820_v20  ;;  %v1655_v58 = vsub.s32 %v1652_v24, %v1820_v20  ;;  %v1673_v61 = vadd.s32 4294967176, %v2104_v2 }
 0x106   :  { %v1669_v4 = vsub.s32 %v1666_v60, %v1820_v20 }
 0x136   :  { %v1523_v11 = vpop.permute.xlu0 %1522 }
 0x137   :  { %v1574_v35 = vrot.slane %v1523_v11, %v1573_v17 }
 0x13c   :  { %v1526_v62 = vpop.permute.xlu1 %1525 }
 0x13d   :  { %v1579_v19 = vrot.slane %v1526_v62, %v1578_v9 }
 0x13f   :  { %v1581_v41 = vsel %vm1580_vm0, %v1579_v19, %v1574_v35 }
 0x140   :  { %v1529_v63 = vpop.permute.xlu1 %1528 }
 0x141   :  { %v1586_v30 = vrot.slane %v1529_v63, %v1585_v12 }
 0x143   :  { %v1588_v45 = vsel %vm1587_vm1, %v1586_v30, %v1581_v41 }
 0x145   :  { %v1532_v0 = vpop.permute.xlu1 %1531 }
 0x146   :  { %v1593_v37 = vrot.slane %v1532_v0, %v1592_v3 }
 0x148   :  { %v1595_v22 = vsel %vm1594_vm2, %v1593_v37, %v1588_v45 }
 0x14a   :  { %v1535_v50 = vpop.permute.xlu1 %1534 }
 0x14b   :  { %v1600_v32 = vrot.slane %v1535_v50, %v1599_v16  ;;  %v1662_v50 = vsub.s32 %v1659_v26, %v1820_v20 }
 0x14d   :  { %v1602_v49 = vsel %vm1601_vm3, %v1600_v32, %v1595_v22 }
 0x150   :  { %v1550_v33 = vpop.permute.xlu0 %1549 }
 0x151   :  { %v1635_v57 = vrot.slane %v1550_v33, %v1634_v52 }
 0x155   :  { %v1538_v1 = vpop.permute.xlu1 %1537 }
 0x156   :  { %v1607_v43 = vrot.slane %v1538_v1, %v1606_v21 }
 0x158   :  { %v1609_v54 = vsel %vm1608_vm4, %v1607_v43, %v1602_v49 }
 0x15a   :  { %v1556_v23 = vpop.permute.xlu0 %1555 }
 0x15b   :  { %v1649_v0 = vrot.slane %v1556_v23, %v1648_v29 }
 0x15f   :  { %v1541_v5 = vpop.permute.xlu1 %1540 }
 0x160   :  { %v1614_v46 = vrot.slane %v1541_v5, %v1613_v34  ;;  %v1676_v5 = vsub.s32 %v1673_v61, %v1820_v20 }
 0x162   :  { %v1616_v25 = vsel %vm1615_vm5, %v1614_v46, %v1609_v54 }
 0x165   :  { %v1562_v59 = vpop.permute.xlu0 %1561 }
 0x166   :  { %v1663_v9 = vrot.slane %v1562_v59, %v1662_v50 }
 0x16a   :  { %v1544_v15 = vpop.permute.xlu1 %1543 }
 0x16b   :  { %v1621_v48 = vrot.slane %v1544_v15, %v1620_v38 }
 0x16d   :  { %v1623_v55 = vsel %vm1622_vm6, %v1621_v48, %v1616_v25 }
 0x16f   :  { %v1568_v7 = vpop.permute.xlu0 %1567 }
 0x170   :  { %v1677_v11 = vrot.slane %v1568_v7, %v1676_v5 }
 0x174   :  { %v1547_v44 = vpop.permute.xlu1 %1546 }
 0x175   :  { %v1628_v51 = vrot.slane %v1547_v44, %v1627_v39 }
 0x177   :  { %v1630_v27 = vsel %vm1629_vm7, %v1628_v51, %v1623_v55 }
 0x178   :  { %v1637_v36 = vsel %vm1636_vm8, %v1635_v57, %v1630_v27 }
 0x17a   :  { %v1553_v56 = vpop.permute.xlu1 %1552 }
 0x17b   :  { %v1642_v28 = vrot.slane %v1553_v56, %v1641_v53 }
 0x17d   :  { %v1644_v62 = vsel %vm1643_vm9, %v1642_v28, %v1637_v36 }
 0x17e   :  { %v1651_v6 = vsel %vm1650_vm10, %v1649_v0, %v1644_v62 }
 0x17f   :  { %v1559_v63 = vpop.permute.xlu1 %1558 }
 0x180   :  { %v1656_v1 = vrot.slane %v1559_v63, %v1655_v58 }
 0x182   :  { %v1658_v8 = vsel %vm1657_vm11, %v1656_v1, %v1651_v6 }
 0x183   :  { %v1665_v12 = vsel %vm1664_vm12, %v1663_v9, %v1658_v8 }
 0x184   :  { %v1565_v2 = vpop.permute.xlu1 %1564 }
 0x185   :  { %v1670_v10 = vrot.slane %v1565_v2, %v1669_v4 }
 0x187   :  { %v1672_v13 = vsel %vm1671_vm13, %v1670_v10, %v1665_v12 }
 0x188   :  { %v1679_v17 = vsel %vm1678_vm14, %v1677_v11, %v1672_v13 }
 0x189   :  { %v1686_v3 = vrot.slane %v1679_v17, %v1847_v31 }
 0x18b   :  { %v1693_v15 = vrot.slane %v1686_v3, %v1847_v31 }
 0x18d   :  { %v1695_v16 = vadd.f32 %v1693_v15, %v160_v14 }
 0x18f   :  { %1696 = vst [vmem:[#allocation2] sm:$0x1] %v1695_v16 }
 0x196   :  { %v1700_v20 = vld [vmem:[#allocation2] sm:$0x1] }
 0x197   :  { %1733 = vlog2.f32 %v1700_v20 }
 0x1a1   :  { %v1734_v18 = vpop.eup %1733 }
 0x1a2   :  { %v1702_v19 = vmul.f32 0.6931472, %v1734_v18 }
 0x1a4   :  { %v1723_v21 = vadd.f32 -5.5451775, %v1702_v19 }
 0x1a6   :  { %v1704_v30 = vmul.f32 0.33333334, %v1723_v21 }
 0x1a8   :  { %v1705_v33 = vmul.f32 1.442695, %v1704_v30 }
 0x1aa   :  { %1735 = vpow2.f32 %v1705_v33 }
 0x1b4   :  { %v1736_v34 = vpop.eup %1735 }
 0x1b5   :  { %1707 = vst [vmem:[#allocation7] sm:$0x1] %v1736_v34 }
 0x1b6   :  { %1770 = shalt.err (!%p1767_p12)
}
 0x1b7   :  { %s1771_s27 = scalar_lea.hbm %s2154_s2, 16 }
 0x1b8   :  { %p1772_p13 = scmp.ne.s32.totalorder %s2154_s2, %s1771_s27  ;;  %p1775_p0 = scmp.lt.u32.totalorder %s1771_s27, %s2154_s2 }
 0x1ba   :  { %p1777_p1 = pnand %p1775_p0, %p1772_p13 }
 0x1bc   :  { %1780 = shalt.err (!%p1777_p1)
}
 0x1bd   :  { %1717 = dma.vmem_to_hbm [thread:$0]  %s1715_s22, 16, %s2154_s2, [#allocation6]  }
 0x1be   :  { %1783 = dma.done.wait [#allocation6], 16  }
 0x1bf   :  { %1784 = vsyncadd [#allocation6], 4294967280 }
 0x1c0   :  { %1721 = vsyncpa [#allocation5], 1 }
 0x1c1   :  { %1722 = vsyncpa [#allocation6], 1 }

</bundles_post_ra>
